<compile_context>
chip_gen: v5e
topology: v5e:2x2
jax: 0.10.0
libtpu: 0.0.40
codegen_flags: <defaults>
</compile_context>

<pallas_src>
import functools

import jax
import jax.numpy as jnp
from jax.experimental import pallas as pl
from jax.experimental.pallas import tpu as pltpu

BN_EPS = 1e-5


def _round_up(x, m):
    return ((x + m - 1) // m) * m


def _ibn_head_kernel(ft_ref, params_ref, w_ref, fi_ref, out_ref, fi_acc):
    """Grid over N-tiles.  BN runs once (step 0); every step does one [B,E]@[E,tn]."""
    # Hoisted BatchNorm: compute f_i once, keep an f32 copy resident in VMEM scratch.
    @pl.when(pl.program_id(0) == 0)
    def _():
        ft = ft_ref[...].astype(jnp.float32)                  # [B, E]
        scale = params_ref[0:1, :]                            # [1, E] (f32)
        shift = params_ref[1:2, :]                            # [1, E] (f32)
        fi = ft * scale + shift
        fi_acc[...] = fi
        fi_ref[...] = fi.astype(fi_ref.dtype)                 # resident block, one writeback

    # Classifier tile: [B, E] @ [E, tn] -> [B, tn] on the MXU (f32 accumulation).
    lhs = fi_acc[...]
    if jnp.dtype(w_ref.dtype).itemsize < 4:
        lhs = lhs.astype(w_ref.dtype)                         # bf16 x bf16 fast MXU path
    out_ref[...] = jnp.dot(
        lhs, w_ref[...], preferred_element_type=jnp.float32).astype(out_ref.dtype)


@functools.partial(jax.jit, static_argnames=("max_tile_n",))
def ibn_a_head(f_t, gamma, beta, running_mean, running_var, w_t, *, max_tile_n=512):
    """f_t: [B, E]; gamma/beta/mean/var: [E]; w_t: [E, N] (transposed Linear weight).

    Returns (f_t, f_i, out) matching IBN_A.forward semantics (eval-mode BN).
    """
    B, E = f_t.shape
    N = w_t.shape[1]

    # Fold eval-mode BN into one scale/shift pair (tiny [E] precompute in XLA).
    scale = gamma.astype(jnp.float32) * jax.lax.rsqrt(
        running_var.astype(jnp.float32) + BN_EPS)
    shift = beta.astype(jnp.float32) - running_mean.astype(jnp.float32) * scale
    params = jnp.stack([scale, shift], axis=0)                 # [2, E], f32

    # Choose N tiling: single resident weight block when it is small enough, otherwise
    # wide lane-aligned tiles (multiple of 128, double-buffered in default scoped VMEM).
    itemsize = jnp.dtype(w_t.dtype).itemsize
    n_pad128 = _round_up(N, 128)
    if E * n_pad128 * itemsize <= 8 * 1024 * 1024:
        tile_n = n_pad128
        n_pad = n_pad128
    else:
        tile_n = max(128, (max_tile_n // 128) * 128)
        n_pad = _round_up(N, tile_n)
    if n_pad != N:
        # Zero-pad the extra classifier columns; the padded logits are sliced off below.
        w_t = jnp.pad(w_t, ((0, 0), (0, n_pad - N)))

    f_i, out_padded = pl.pallas_call(
        _ibn_head_kernel,
        out_shape=(
            jax.ShapeDtypeStruct((B, E), f_t.dtype),           # f_i
            jax.ShapeDtypeStruct((B, n_pad), f_t.dtype),       # classifier logits (padded)
        ),
        grid_spec=pltpu.PrefetchScalarGridSpec(
            num_scalar_prefetch=0,
            grid=(n_pad // tile_n,),
            in_specs=[
                pl.BlockSpec((B, E), lambda j: (0, 0)),        # f_t (resident)
                pl.BlockSpec((2, E), lambda j: (0, 0)),        # packed BN scale/shift
                pl.BlockSpec((E, tile_n), lambda j: (0, j)),   # weight tile (streamed)
            ],
            out_specs=[
                pl.BlockSpec((B, E), lambda j: (0, 0)),        # f_i (same block each step)
                pl.BlockSpec((B, tile_n), lambda j: (0, j)),   # out tile (lane-dense)
            ],
            scratch_shapes=[pltpu.VMEM((B, E), jnp.float32)],  # persistent f32 f_i
        ),
        compiler_params=pltpu.CompilerParams(
            # f_i output block is resident across the N axis -> must be "arbitrary".
            dimension_semantics=("arbitrary",)),
    )(f_t, params, w_t)

    out = out_padded[:, :N] if n_pad != N else out_padded
    return f_t, f_i, out


def _reference(f_t, gamma, beta, mean, var, w_t):
    fi = (f_t - mean) * jax.lax.rsqrt(var + BN_EPS) * gamma + beta
    return f_t, fi, fi @ w_t


if __name__ == "__main__":
    # Small shapes consistent with the module: batch=8, embedding_dim=256 (stand-in for
    # 2048), num_classes=576 (the module default; exercises the N-padding path).
    B, E, N = 8, 256, 576

    key = jax.random.PRNGKey(0)
    k_ft, k_g, k_b, k_m, k_v, k_w = jax.random.split(key, 6)

    # Backbone output features (stand-in for resnet101_ibn_a with fc = Identity).
    f_t = jax.random.normal(k_ft, (B, E), dtype=jnp.float32)

    # BatchNorm1d parameters. weights_init_kaiming sets weight=1, bias=0 and default
    # running stats are (0, 1); perturb deterministically so normalization is exercised.
    gamma = 1.0 + 0.1 * jax.random.normal(k_g, (E,), dtype=jnp.float32)
    beta = 0.1 * jax.random.normal(k_b, (E,), dtype=jnp.float32)
    running_mean = 0.1 * jax.random.normal(k_m, (E,), dtype=jnp.float32)
    running_var = 1.0 + 0.1 * jax.random.uniform(k_v, (E,), dtype=jnp.float32)

    # classifier: nn.Linear(E, N, bias=False), weight ~ Normal(0, 0.001), shape [N, E].
    w = 0.001 * jax.random.normal(k_w, (N, E), dtype=jnp.float32)
    w_t = w.T  # [E, N] for the kernel matmul

    f_t_out, f_i, out = ibn_a_head(f_t, gamma, beta, running_mean, running_var, w_t)
    jax.block_until_ready((f_t_out, f_i, out))

    r_ft, r_fi, r_out = _reference(f_t, gamma, beta, running_mean, running_var, w_t)
    assert jnp.allclose(f_t_out, r_ft)
    assert jnp.allclose(f_i, r_fi, atol=1e-5, rtol=1e-5)
    assert jnp.allclose(out, r_out, atol=1e-5, rtol=1e-5)

    print("KERNEL_OK")
</pallas_src>

<mosaic_0001>
module attributes {stable_mosaic.version = 11 : i64} {
  func.func @_ibn_head_kernel(%arg0: i32, %arg1: memref<8x256xf32, #tpu.memory_space<vmem>>, %arg2: memref<2x256xf32, #tpu.memory_space<vmem>>, %arg3: memref<256x640xf32, #tpu.memory_space<vmem>>, %arg4: memref<8x256xf32, #tpu.memory_space<vmem>>, %arg5: memref<8x640xf32, #tpu.memory_space<vmem>>, %arg6: memref<8x256xf32, #tpu.memory_space<vmem>>) attributes {dimension_semantics = [#tpu.dimension_semantics<arbitrary>], iteration_bounds = array<i64: 1>, scalar_prefetch = 0 : i64, scratch_operands = 1 : i64, tpu.core_type = #tpu.core_type<tc>, window_params = [{pipeline_mode = #tpu.pipeline_mode<synchronous>, transform_indices = @transform_0, window_bounds = array<i64: 8, 256>}, {pipeline_mode = #tpu.pipeline_mode<synchronous>, transform_indices = @transform_1, window_bounds = array<i64: 2, 256>}, {transform_indices = @transform_2, window_bounds = array<i64: 256, 640>}, {pipeline_mode = #tpu.pipeline_mode<synchronous>, transform_indices = @transform_3, window_bounds = array<i64: 8, 256>}, {transform_indices = @transform_4, window_bounds = array<i64: 8, 640>}]} {
    %c0_i32 = arith.constant 0 : i32
    %0 = arith.cmpi eq, %arg0, %c0_i32 : i32
    %1 = arith.extui %0 : i1 to i32
    %c0_i32_0 = arith.constant 0 : i32
    %2 = arith.cmpi ne, %1, %c0_i32_0 : i32
    scf.if %2 {
      %c0_6 = arith.constant 0 : index
      %c0_7 = arith.constant 0 : index
      %7 = vector.load %arg1[%c0_6, %c0_7] : memref<8x256xf32, #tpu.memory_space<vmem>>, vector<8x256xf32>
      %c0_8 = arith.constant 0 : index
      %c0_9 = arith.constant 0 : index
      %8 = vector.load %arg2[%c0_8, %c0_9] : memref<2x256xf32, #tpu.memory_space<vmem>>, vector<1x256xf32>
      %c1 = arith.constant 1 : index
      %c0_10 = arith.constant 0 : index
      %9 = vector.load %arg2[%c1, %c0_10] : memref<2x256xf32, #tpu.memory_space<vmem>>, vector<1x256xf32>
      %10 = vector.broadcast %8 : vector<1x256xf32> to vector<8x256xf32>
      %11 = arith.mulf %7, %10 : vector<8x256xf32>
      %12 = vector.broadcast %9 : vector<1x256xf32> to vector<8x256xf32>
      %13 = arith.addf %11, %12 : vector<8x256xf32>
      %c0_11 = arith.constant 0 : index
      %c0_12 = arith.constant 0 : index
      %14 = vector.load %arg6[%c0_11, %c0_12] : memref<8x256xf32, #tpu.memory_space<vmem>>, vector<8x256xf32>
      tpu.vector_store %arg6[%c0_11, %c0_12], %13 {strides = array<i32>} : memref<8x256xf32, #tpu.memory_space<vmem>>, vector<8x256xf32>,
      %c0_13 = arith.constant 0 : index
      %c0_14 = arith.constant 0 : index
      %15 = vector.load %arg4[%c0_13, %c0_14] : memref<8x256xf32, #tpu.memory_space<vmem>>, vector<8x256xf32>
      tpu.vector_store %arg4[%c0_13, %c0_14], %13 {strides = array<i32>} : memref<8x256xf32, #tpu.memory_space<vmem>>, vector<8x256xf32>,
    } else {
    }
    %c0 = arith.constant 0 : index
    %c0_1 = arith.constant 0 : index
    %3 = vector.load %arg6[%c0, %c0_1] : memref<8x256xf32, #tpu.memory_space<vmem>>, vector<8x256xf32>
    %c0_2 = arith.constant 0 : index
    %c0_3 = arith.constant 0 : index
    %4 = vector.load %arg3[%c0_2, %c0_3] : memref<256x640xf32, #tpu.memory_space<vmem>>, vector<256x640xf32>
    %cst = arith.constant dense<0.000000e+00> : vector<8x640xf32>
    %5 = tpu.matmul %3, %4, %cst {dimension_numbers = #tpu.dot_dimension_numbers<[1], [0], [0], [1], [0, 0, 1, 1], [], []>} : vector<8x256xf32>, vector<256x640xf32>, vector<8x640xf32> -> vector<8x640xf32>
    %c0_4 = arith.constant 0 : index
    %c0_5 = arith.constant 0 : index
    %6 = vector.load %arg5[%c0_4, %c0_5] : memref<8x640xf32, #tpu.memory_space<vmem>>, vector<8x640xf32>
    tpu.vector_store %arg5[%c0_4, %c0_5], %5 {strides = array<i32>} : memref<8x640xf32, #tpu.memory_space<vmem>>, vector<8x640xf32>,
    return
  }
  func.func @transform_0(%arg0: i32) -> (i32, i32) {
    %c0_i32 = arith.constant 0 : i32
    %c0_i32_0 = arith.constant 0 : i32
    %c0_i32_1 = arith.constant 0 : i32
    return %c0_i32, %c0_i32_0 : i32, i32
  }
  func.func @transform_1(%arg0: i32) -> (i32, i32) {
    %c0_i32 = arith.constant 0 : i32
    %c0_i32_0 = arith.constant 0 : i32
    %c0_i32_1 = arith.constant 0 : i32
    return %c0_i32, %c0_i32_0 : i32, i32
  }
  func.func @transform_2(%arg0: i32) -> (i32, i32) {
    %c0_i32 = arith.constant 0 : i32
    %c0_i32_0 = arith.constant 0 : i32
    return %c0_i32, %arg0 : i32, i32
  }
  func.func @transform_3(%arg0: i32) -> (i32, i32) {
    %c0_i32 = arith.constant 0 : i32
    %c0_i32_0 = arith.constant 0 : i32
    %c0_i32_1 = arith.constant 0 : i32
    return %c0_i32, %c0_i32_0 : i32, i32
  }
  func.func @transform_4(%arg0: i32) -> (i32, i32) {
    %c0_i32 = arith.constant 0 : i32
    %c0_i32_0 = arith.constant 0 : i32
    return %c0_i32, %arg0 : i32, i32
  }
}

</mosaic_0001>

<bundles_post_ra>
// kernel: ibn_a_head.1
= control target key start
LH: loop header
LB: loop body
LE: loop exit
PB: predicated region body
PF: predicated region fallthrough
CT: control target
= control target key end

     0   :  { %10 = vsyncpa [#allocation4], 0  ;;  %s1040_s0 = inlined_call_operand.vmem [shape: f32[8,256], index: 0, kind: input, shape index: {}]   ;;  %s1041_s1 = inlined_call_operand.vmem [shape: f32[2,256], index: 1, kind: input, shape index: {}]   ;;  %s1042_s2 = inlined_call_operand.vmem [shape: f32[256,640], index: 2, kind: input, shape index: {}]   ;;  %s1043_s3 = inlined_call_operand.hbm [shape: f32[8,256], index: 3, kind: output, shape index: {0}]   ;;  %s1044_s4 = inlined_call_operand.hbm [shape: f32[8,640], index: 4, kind: output, shape index: {1}]  }
   0x1   :  { %v122_v0 = vld [vmem:[%s1042_s2 + $0x258] sm:$0xff]  ;;  %v117_v2 = vld [vmem:[%s1042_s2 + $0x230] sm:$0xff]  ;;  %v112_v4 = vld [vmem:[%s1042_s2 + $0x208] sm:$0xff] }
   0x2   :  { %v202_v1 = vld [vmem:[%s1042_s2 + $0x4d8] sm:$0xff]  ;;  %207 = vmatpush.msra.mxu0 %v122_v0  ;;  %v197_v3 = vld [vmem:[%s1042_s2 + $0x4b0] sm:$0xff]  ;;  %v192_v5 = vld [vmem:[%s1042_s2 + $0x488] sm:$0xff] }
   0x3   :  { %227 = vmatpush.msra.mxu1 %v202_v1  ;;  %v107_v6 = vld [vmem:[%s1042_s2 + $0x1e0] sm:$0xff]  ;;  %v102_v8 = vld [vmem:[%s1042_s2 + $0x1b8] sm:$0xff]  ;;  %v97_v10 = vld [vmem:[%s1042_s2 + $0x190] sm:$0xff] }
   0x4   :  { %208 = vmatpush.msra.mxu0 %v117_v2  ;;  %v187_v7 = vld [vmem:[%s1042_s2 + $0x460] sm:$0xff]  ;;  %v182_v9 = vld [vmem:[%s1042_s2 + $0x438] sm:$0xff]  ;;  %v177_v11 = vld [vmem:[%s1042_s2 + $0x410] sm:$0xff] }
   0x5   :  { %228 = vmatpush.msra.mxu1 %v197_v3  ;;  %v123_v12 = vld [vmem:[%s1042_s2 + $0x260] sm:$0xff]  ;;  %v92_v13 = vld [vmem:[%s1042_s2 + $0x168] sm:$0xff]  ;;  %v118_v16 = vld [vmem:[%s1042_s2 + $0x238] sm:$0xff] }
   0x6   :  { %209 = vmatpush.msra.mxu0 %v112_v4  ;;  %v203_v14 = vld [vmem:[%s1042_s2 + $0x4e0] sm:$0xff]  ;;  %v172_v15 = vld [vmem:[%s1042_s2 + $0x3e8] sm:$0xff]  ;;  %247 = vmatpush.msra.mxu2 %v123_v12  ;;  %v198_v17 = vld [vmem:[%s1042_s2 + $0x4b8] sm:$0xff] }
   0x7   :  { %229 = vmatpush.msra.mxu1 %v192_v5  ;;  %267 = vmatpush.msra.mxu3 %v203_v14  ;;  %v113_v18 = vld [vmem:[%s1042_s2 + $0x210] sm:$0xff]  ;;  %v87_v20 = vld [vmem:[%s1042_s2 + $0x140] sm:$0xff]  ;;  %v108_v22 = vld [vmem:[%s1042_s2 + $0x1e8] sm:$0xff] }
   0x8   :  { %210 = vmatpush.msra.mxu0 %v107_v6  ;;  %v193_v19 = vld [vmem:[%s1042_s2 + $0x490] sm:$0xff]  ;;  %v167_v21 = vld [vmem:[%s1042_s2 + $0x3c0] sm:$0xff]  ;;  %248 = vmatpush.msra.mxu2 %v118_v16  ;;  %v188_v23 = vld [vmem:[%s1042_s2 + $0x468] sm:$0xff] }
   0x9   :  { %230 = vmatpush.msra.mxu1 %v187_v7  ;;  %268 = vmatpush.msra.mxu3 %v198_v17  ;;  %v82_v24 = vld [vmem:[%s1042_s2 + $0x118] sm:$0xff]  ;;  %v103_v26 = vld [vmem:[%s1042_s2 + $0x1c0] sm:$0xff]  ;;  %v77_v28 = vld [vmem:[%s1042_s2 + $0xf0] sm:$0xff] }
   0xa   :  { %211 = vmatpush.msra.mxu0 %v102_v8  ;;  %v162_v25 = vld [vmem:[%s1042_s2 + $0x398] sm:$0xff]  ;;  %249 = vmatpush.msra.mxu2 %v113_v18  ;;  %v183_v27 = vld [vmem:[%s1042_s2 + $0x440] sm:$0xff]  ;;  %v157_v29 = vld [vmem:[%s1042_s2 + $0x370] sm:$0xff] }
   0xb   :  { %231 = vmatpush.msra.mxu1 %v182_v9  ;;  %269 = vmatpush.msra.mxu3 %v193_v19  ;;  %v98_v30 = vld [vmem:[%s1042_s2 + $0x198] sm:$0xff]  ;;  %v72_v32 = vld [vmem:[%s1042_s2 + $0xc8] sm:$0xff]  ;;  %v93_v34 = vld [vmem:[%s1042_s2 + $0x170] sm:$0xff] }
   0xc   :  { %212 = vmatpush.msra.mxu0 %v97_v10  ;;  %250 = vmatpush.msra.mxu2 %v108_v22  ;;  %v178_v31 = vld [vmem:[%s1042_s2 + $0x418] sm:$0xff]  ;;  %v152_v33 = vld [vmem:[%s1042_s2 + $0x348] sm:$0xff]  ;;  %v173_v35 = vld [vmem:[%s1042_s2 + $0x3f0] sm:$0xff] }
   0xd   :  { %232 = vmatpush.msra.mxu1 %v177_v11  ;;  %270 = vmatpush.msra.mxu3 %v188_v23  ;;  %v67_v36 = vld [vmem:[%s1042_s2 + $0xa0] sm:$0xff]  ;;  %v88_v38 = vld [vmem:[%s1042_s2 + $0x148] sm:$0xff]  ;;  %v62_v40 = vld [vmem:[%s1042_s2 + $0x78] sm:$0xff] }
   0xe   :  { %213 = vmatpush.msra.mxu0 %v92_v13  ;;  %251 = vmatpush.msra.mxu2 %v103_v26  ;;  %v147_v37 = vld [vmem:[%s1042_s2 + $0x320] sm:$0xff]  ;;  %v168_v39 = vld [vmem:[%s1042_s2 + $0x3c8] sm:$0xff]  ;;  %v142_v41 = vld [vmem:[%s1042_s2 + $0x2f8] sm:$0xff] }
   0xf   :  { %233 = vmatpush.msra.mxu1 %v172_v15  ;;  %271 = vmatpush.msra.mxu3 %v183_v27  ;;  %v83_v42 = vld [vmem:[%s1042_s2 + $0x120] sm:$0xff]  ;;  %v57_v44 = vld [vmem:[%s1042_s2 + $0x50] sm:$0xff]  ;;  %v78_v46 = vld [vmem:[%s1042_s2 + $0xf8] sm:$0xff] }
  0x10   :  { %214 = vmatpush.msra.mxu0 %v87_v20  ;;  %252 = vmatpush.msra.mxu2 %v98_v30  ;;  %v163_v43 = vld [vmem:[%s1042_s2 + $0x3a0] sm:$0xff]  ;;  %v137_v45 = vld [vmem:[%s1042_s2 + $0x2d0] sm:$0xff]  ;;  %v158_v47 = vld [vmem:[%s1042_s2 + $0x378] sm:$0xff] }
  0x11   :  { %234 = vmatpush.msra.mxu1 %v167_v21  ;;  %272 = vmatpush.msra.mxu3 %v178_v31  ;;  %v52_v48 = vld [vmem:[%s1042_s2 + $0x28] sm:$0xff]  ;;  %v73_v50 = vld [vmem:[%s1042_s2 + $0xd0] sm:$0xff]  ;;  %v47_v52 = vld [vmem:[%s1042_s2] sm:$0xff] }
  0x12   :  { %215 = vmatpush.msra.mxu0 %v82_v24  ;;  %253 = vmatpush.msra.mxu2 %v93_v34  ;;  %v132_v49 = vld [vmem:[%s1042_s2 + $0x2a8] sm:$0xff]  ;;  %v153_v51 = vld [vmem:[%s1042_s2 + $0x350] sm:$0xff]  ;;  %v127_v53 = vld [vmem:[%s1042_s2 + $0x280] sm:$0xff] }
  0x13   :  { %235 = vmatpush.msra.mxu1 %v162_v25  ;;  %273 = vmatpush.msra.mxu3 %v173_v35  ;;  %v124_v54 = vld [vmem:[%s1042_s2 + $0x268] sm:$0xff]  ;;  %v119_v58 = vld [vmem:[%s1042_s2 + $0x240] sm:$0xff]  ;;  %v114_v60 = vld [vmem:[%s1042_s2 + $0x218] sm:$0xff] }
  0x14   :  { %216 = vmatpush.msra.mxu0 %v77_v28  ;;  %254 = vmatpush.msra.mxu2 %v88_v38  ;;  %v204_v55 = vld [vmem:[%s1042_s2 + $0x4e8] sm:$0xff]  ;;  %v199_v59 = vld [vmem:[%s1042_s2 + $0x4c0] sm:$0xff]  ;;  %v194_v61 = vld [vmem:[%s1042_s2 + $0x498] sm:$0xff] }
  0x15   :  { %236 = vmatpush.msra.mxu1 %v157_v29  ;;  %274 = vmatpush.msra.mxu3 %v168_v39  ;;  %v68_v56 = vld [vmem:[%s1042_s2 + $0xa8] sm:$0xff]  ;;  %v63_v62 = vld [vmem:[%s1042_s2 + $0x80] sm:$0xff]  ;;  %v109_v0 = vld [vmem:[%s1042_s2 + $0x1f0] sm:$0xff] }
  0x16   :  { %217 = vmatpush.msra.mxu0 %v72_v32  ;;  %255 = vmatpush.msra.mxu2 %v83_v42  ;;  %v148_v57 = vld [vmem:[%s1042_s2 + $0x328] sm:$0xff]  ;;  %v143_v63 = vld [vmem:[%s1042_s2 + $0x300] sm:$0xff]  ;;  %v58_v1 = vld [vmem:[%s1042_s2 + $0x58] sm:$0xff] }
  0x17   :  { %237 = vmatpush.msra.mxu1 %v152_v33  ;;  %275 = vmatpush.msra.mxu3 %v163_v43  ;;  %v138_v2 = vld [vmem:[%s1042_s2 + $0x2d8] sm:$0xff]  ;;  %v22_v3 = vld [vmem:[%s1040_s0] sm:$0xff]  ;;  %v23_v5 = vld [vmem:[%s1040_s0 + $0x8] sm:$0xff] }
  0x18   :  { %218 = vmatpush.msra.mxu0 %v67_v36  ;;  %256 = vmatpush.msra.mxu2 %v78_v46  ;;  %v24_v4 = vld [vmem:[%s1041_s1] ss:$2 sm:$0x3]  ;;  %v189_v6 = vld [vmem:[%s1042_s2 + $0x470] sm:$0xff]  ;;  %v104_v14 = vld [vmem:[%s1042_s2 + $0x1c8] sm:$0xff] }
  0x19   :  { %238 = vmatpush.msra.mxu1 %v147_v37  ;;  %276 = vmatpush.msra.mxu3 %v158_v47  ;;  %v444_v7 = vld [vmem:[%s1041_s1 + $0x1] ss:$2 sm:$0x3]  ;;  %v28_v8 = vperm.slane %v24_v4, 0  ;;  %v29_v9 = vperm.slane %v24_v4, 1  ;;  %v53_v10 = vld [vmem:[%s1042_s2 + $0x30] sm:$0xff] }
  0x1a   :  { %219 = vmatpush.msra.mxu0 %v62_v40  ;;  %257 = vmatpush.msra.mxu2 %v73_v50  ;;  %v133_v11 = vld [vmem:[%s1042_s2 + $0x2b0] sm:$0xff]  ;;  %v35_v12 = vperm.slane %v444_v7, 0  ;;  %v36_v13 = vperm.slane %v444_v7, 1  ;;  %v184_v15 = vld [vmem:[%s1042_s2 + $0x448] sm:$0xff]  ;;  %v99_v20 = vld [vmem:[%s1042_s2 + $0x1a0] sm:$0xff] }
  0x1b   :  { %239 = vmatpush.msra.mxu1 %v142_v41  ;;  %277 = vmatpush.msra.mxu3 %v153_v51  ;;  %v32_v16 = vmul.f32 %v28_v8, %v22_v3  ;;  %v33_v17 = vmul.f32 %v29_v9, %v23_v5  ;;  %v48_v18 = vld [vmem:[%s1042_s2 + $0x8] sm:$0xff]  ;;  %v179_v21 = vld [vmem:[%s1042_s2 + $0x420] sm:$0xff]  ;;  %v125_v23 = vld [vmem:[%s1042_s2 + $0x270] sm:$0xff] }
  0x1c   :  { %220 = vmatpush.msra.mxu0 %v57_v44  ;;  %258 = vmatpush.msra.mxu2 %v68_v56  ;;  %v128_v19 = vld [vmem:[%s1042_s2 + $0x288] sm:$0xff]  ;;  %v205_v24 = vld [vmem:[%s1042_s2 + $0x4f0] sm:$0xff]  ;;  %v94_v26 = vld [vmem:[%s1042_s2 + $0x178] sm:$0xff] }
  0x1d   :  { %240 = vmatpush.msra.mxu1 %v137_v45  ;;  %278 = vmatpush.msra.mxu3 %v148_v57  ;;  %v766_v22 = vadd.f32 %v35_v12, %v32_v16  ;;  %v774_v25 = vadd.f32 %v36_v13, %v33_v17  ;;  %v174_v27 = vld [vmem:[%s1042_s2 + $0x3f8] sm:$0xff]  ;;  %v120_v28 = vld [vmem:[%s1042_s2 + $0x248] sm:$0xff]  ;;  %v89_v30 = vld [vmem:[%s1042_s2 + $0x150] sm:$0xff] }
  0x1e   :  { %221 = vmatpush.msra.mxu0 %v52_v48  ;;  %259 = vmatpush.msra.mxu2 %v63_v62  ;;  %v200_v29 = vld [vmem:[%s1042_s2 + $0x4c8] sm:$0xff]  ;;  %v169_v31 = vld [vmem:[%s1042_s2 + $0x3d0] sm:$0xff]  ;;  %v115_v32 = vld [vmem:[%s1042_s2 + $0x220] sm:$0xff] }
  0x1f   :  { %241 = vmatpush.msra.mxu1 %v132_v49  ;;  %279 = vmatpush.msra.mxu3 %v143_v63  ;;  %43 = vst [vmem:[#allocation3] sm:$0xff] %v766_v22  ;;  %v195_v33 = vld [vmem:[%s1042_s2 + $0x4a0] sm:$0xff]  ;;  %v84_v34 = vld [vmem:[%s1042_s2 + $0x128] sm:$0xff]  ;;  %v110_v38 = vld [vmem:[%s1042_s2 + $0x1f8] sm:$0xff] }
  0x20   :  { %222 = vmatpush.msra.mxu0 %v47_v52  ;;  %260 = vmatpush.msra.mxu2 %v58_v1  ;;  %44 = vst [vmem:[#allocation3 + $0x8] sm:$0xff] %v774_v25  ;;  %v164_v35 = vld [vmem:[%s1042_s2 + $0x3a8] sm:$0xff]  ;;  %v79_v36 = vld [vmem:[%s1042_s2 + $0x100] sm:$0xff]  ;;  %v190_v39 = vld [vmem:[%s1042_s2 + $0x478] sm:$0xff] }
  0x21   :  { %242 = vmatpush.msra.mxu1 %v127_v53  ;;  %280 = vmatpush.msra.mxu3 %v138_v2  ;;  %v159_v37 = vld [vmem:[%s1042_s2 + $0x380] sm:$0xff]  ;;  %v74_v40 = vld [vmem:[%s1042_s2 + $0xd8] sm:$0xff]  ;;  %v105_v42 = vld [vmem:[%s1042_s2 + $0x1d0] sm:$0xff] }
  0x22   :  { %287 = vmatpush.msrb.mxu0 %v124_v54  ;;  %261 = vmatpush.msra.mxu2 %v53_v10  ;;  %v154_v41 = vld [vmem:[%s1042_s2 + $0x358] sm:$0xff]  ;;  %v185_v43 = vld [vmem:[%s1042_s2 + $0x450] sm:$0xff] }
  0x23   :  { %307 = vmatpush.msrb.mxu1 %v204_v55  ;;  %281 = vmatpush.msra.mxu3 %v133_v11 }
  0x24   :  { %288 = vmatpush.msrb.mxu0 %v119_v58  ;;  %262 = vmatpush.msra.mxu2 %v48_v18 }
  0x25   :  { %308 = vmatpush.msrb.mxu1 %v199_v59  ;;  %282 = vmatpush.msra.mxu3 %v128_v19 }
  0x26   :  { %289 = vmatpush.msrb.mxu0 %v114_v60  ;;  %327 = vmatpush.msrb.mxu2 %v125_v23 }
  0x27   :  { %309 = vmatpush.msrb.mxu1 %v194_v61  ;;  %347 = vmatpush.msrb.mxu3 %v205_v24 }
  0x28   :  { %290 = vmatpush.msrb.mxu0 %v109_v0  ;;  %328 = vmatpush.msrb.mxu2 %v120_v28 }
  0x29   :  { %310 = vmatpush.msrb.mxu1 %v189_v6  ;;  %348 = vmatpush.msrb.mxu3 %v200_v29 }
  0x2a   :  { %291 = vmatpush.msrb.mxu0 %v104_v14  ;;  %329 = vmatpush.msrb.mxu2 %v115_v32 }
  0x2b   :  { %311 = vmatpush.msrb.mxu1 %v184_v15  ;;  %349 = vmatpush.msrb.mxu3 %v195_v33 }
  0x2c   :  { %292 = vmatpush.msrb.mxu0 %v99_v20  ;;  %243 = vmatmul.f32.vlgmr.msra.gmra.mxu1 %v774_v25 }
  0x2d   :  { %312 = vmatpush.msrb.mxu1 %v179_v21  ;;  %223 = vmatmul.f32.vlgmr.msra.gmra.mxu0 %v766_v22 }
  0x2e   :  { %293 = vmatpush.msrb.mxu0 %v94_v26 }
  0x2f   :  { %313 = vmatpush.msrb.mxu1 %v174_v27 }
  0x30   :  { %294 = vmatpush.msrb.mxu0 %v89_v30 }
  0x31   :  { %314 = vmatpush.msrb.mxu1 %v169_v31 }
  0x32   :  { %295 = vmatpush.msrb.mxu0 %v84_v34 }
  0x33   :  { %315 = vmatpush.msrb.mxu1 %v164_v35 }
  0x34   :  { %296 = vmatpush.msrb.mxu0 %v79_v36 }
  0x35   :  { %316 = vmatpush.msrb.mxu1 %v159_v37 }
  0x36   :  { %11 = vsyncpa [#allocation6], 0  ;;  %v69_v44 = vld [vmem:[%s1042_s2 + $0xb0] sm:$0xff]  ;;  %330 = vmatpush.msrb.mxu2 %v110_v38  ;;  %350 = vmatpush.msrb.mxu3 %v190_v39  ;;  %v100_v46 = vld [vmem:[%s1042_s2 + $0x1a8] sm:$0xff]  ;;  %s499_s17 = smov [#allocation3]   ;;  %s419_s21 = sshll.u32 %s1043_s3, 4  ;;  %s420_s21 = int_to_ptr.hbm [resolvable:$true] %s419_s21 }
  0x37   :  { %v149_v45 = vld [vmem:[%s1042_s2 + $0x330] sm:$0xff]  ;;  %297 = vmatpush.msrb.mxu0 %v74_v40  ;;  %317 = vmatpush.msrb.mxu1 %v154_v41  ;;  %v180_v47 = vld [vmem:[%s1042_s2 + $0x428] sm:$0xff]  ;;  %v95_v50 = vld [vmem:[%s1042_s2 + $0x180] sm:$0xff]  ;;  %s417_s18 = sshll.u32 %s499_s17, 4  ;;  %s430_s24 = sshll.u32 %s1044_s4, 4  ;;  %s418_s18 = int_to_ptr.vmem [resolvable:$true] %s417_s18  ;;  %s431_s24 = int_to_ptr.hbm [resolvable:$true] %s430_s24 }
  0x38   :  { %v64_v48 = vld [vmem:[%s1042_s2 + $0x88] sm:$0xff]  ;;  %331 = vmatpush.msrb.mxu2 %v105_v42  ;;  %351 = vmatpush.msrb.mxu3 %v185_v43  ;;  %v175_v51 = vld [vmem:[%s1042_s2 + $0x400] sm:$0xff]  ;;  %v90_v54 = vld [vmem:[%s1042_s2 + $0x158] sm:$0xff]  ;;  %422 = dma.vmem_to_hbm [thread:$0]  %s418_s18, 256, %s420_s21, [#allocation4]  }
  0x39   :  { %v144_v49 = vld [vmem:[%s1042_s2 + $0x308] sm:$0xff]  ;;  %298 = vmatpush.msrb.mxu0 %v69_v44  ;;  %318 = vmatpush.msrb.mxu1 %v149_v45  ;;  %v59_v52 = vld [vmem:[%s1042_s2 + $0x60] sm:$0xff]  ;;  %v170_v55 = vld [vmem:[%s1042_s2 + $0x3d8] sm:$0xff] }
  0x3a   :  { %v139_v53 = vld [vmem:[%s1042_s2 + $0x2e0] sm:$0xff]  ;;  %332 = vmatpush.msrb.mxu2 %v100_v46  ;;  %352 = vmatpush.msrb.mxu3 %v180_v47  ;;  %v54_v56 = vld [vmem:[%s1042_s2 + $0x38] sm:$0xff]  ;;  %v85_v58 = vld [vmem:[%s1042_s2 + $0x130] sm:$0xff] }
  0x3b   :  { %299 = vmatpush.msrb.mxu0 %v64_v48  ;;  %319 = vmatpush.msrb.mxu1 %v144_v49  ;;  %v134_v57 = vld [vmem:[%s1042_s2 + $0x2b8] sm:$0xff]  ;;  %v165_v59 = vld [vmem:[%s1042_s2 + $0x3b0] sm:$0xff]  ;;  %v80_v0 = vld [vmem:[%s1042_s2 + $0x108] sm:$0xff] }
  0x3c   :  { %333 = vmatpush.msrb.mxu2 %v95_v50  ;;  %353 = vmatpush.msrb.mxu3 %v175_v51  ;;  %v49_v60 = vld [vmem:[%s1042_s2 + $0x10] sm:$0xff]  ;;  %v126_v62 = vld [vmem:[%s1042_s2 + $0x278] sm:$0xff]  ;;  %v160_v1 = vld [vmem:[%s1042_s2 + $0x388] sm:$0xff] }
  0x3d   :  { %300 = vmatpush.msrb.mxu0 %v59_v52  ;;  %320 = vmatpush.msrb.mxu1 %v139_v53  ;;  %v129_v61 = vld [vmem:[%s1042_s2 + $0x290] sm:$0xff]  ;;  %v206_v63 = vld [vmem:[%s1042_s2 + $0x4f8] sm:$0xff]  ;;  %v75_v4 = vld [vmem:[%s1042_s2 + $0xe0] sm:$0xff] }
  0x3e   :  { %334 = vmatpush.msrb.mxu2 %v90_v54  ;;  %354 = vmatpush.msrb.mxu3 %v170_v55  ;;  %v121_v2 = vld [vmem:[%s1042_s2 + $0x250] sm:$0xff]  ;;  %v155_v5 = vld [vmem:[%s1042_s2 + $0x360] sm:$0xff]  ;;  %v116_v6 = vld [vmem:[%s1042_s2 + $0x228] sm:$0xff] }
  0x3f   :  { %301 = vmatpush.msrb.mxu0 %v54_v56  ;;  %321 = vmatpush.msrb.mxu1 %v134_v57  ;;  %v201_v3 = vld [vmem:[%s1042_s2 + $0x4d0] sm:$0xff]  ;;  %v196_v7 = vld [vmem:[%s1042_s2 + $0x4a8] sm:$0xff]  ;;  %v70_v8 = vld [vmem:[%s1042_s2 + $0xb8] sm:$0xff] }
  0x40   :  { %335 = vmatpush.msrb.mxu2 %v85_v58  ;;  %355 = vmatpush.msrb.mxu3 %v165_v59  ;;  %v150_v9 = vld [vmem:[%s1042_s2 + $0x338] sm:$0xff]  ;;  %v111_v10 = vld [vmem:[%s1042_s2 + $0x200] sm:$0xff]  ;;  %v65_v14 = vld [vmem:[%s1042_s2 + $0x90] sm:$0xff] }
  0x41   :  { %302 = vmatpush.msrb.mxu0 %v49_v60  ;;  %322 = vmatpush.msrb.mxu1 %v129_v61  ;;  %v191_v11 = vld [vmem:[%s1042_s2 + $0x480] sm:$0xff]  ;;  %v106_v12 = vld [vmem:[%s1042_s2 + $0x1d8] sm:$0xff]  ;;  %v145_v15 = vld [vmem:[%s1042_s2 + $0x310] sm:$0xff] }
  0x42   :  { %336 = vmatpush.msrb.mxu2 %v80_v0  ;;  %356 = vmatpush.msrb.mxu3 %v160_v1  ;;  %v186_v13 = vld [vmem:[%s1042_s2 + $0x458] sm:$0xff]  ;;  %v101_v16 = vld [vmem:[%s1042_s2 + $0x1b0] sm:$0xff]  ;;  %v60_v18 = vld [vmem:[%s1042_s2 + $0x68] sm:$0xff] }
  0x43   :  { %367 = vmatpush.msra.mxu0 %v126_v62  ;;  %387 = vmatpush.msra.mxu1 %v206_v63  ;;  %v181_v17 = vld [vmem:[%s1042_s2 + $0x430] sm:$0xff]  ;;  %v140_v19 = vld [vmem:[%s1042_s2 + $0x2e8] sm:$0xff]  ;;  %v55_v23 = vld [vmem:[%s1042_s2 + $0x40] sm:$0xff] }
  0x44   :  { %337 = vmatpush.msrb.mxu2 %v75_v4  ;;  %357 = vmatpush.msrb.mxu3 %v155_v5  ;;  %v96_v20 = vld [vmem:[%s1042_s2 + $0x188] sm:$0xff]  ;;  %v135_v24 = vld [vmem:[%s1042_s2 + $0x2c0] sm:$0xff]  ;;  %v86_v28 = vld [vmem:[%s1042_s2 + $0x138] sm:$0xff] }
  0x45   :  { %368 = vmatpush.msra.mxu0 %v121_v2  ;;  %388 = vmatpush.msra.mxu1 %v201_v3  ;;  %v176_v21 = vld [vmem:[%s1042_s2 + $0x408] sm:$0xff]  ;;  %v91_v26 = vld [vmem:[%s1042_s2 + $0x160] sm:$0xff]  ;;  %v166_v29 = vld [vmem:[%s1042_s2 + $0x3b8] sm:$0xff] }
  0x46   :  { %338 = vmatpush.msrb.mxu2 %v70_v8  ;;  %358 = vmatpush.msrb.mxu3 %v150_v9  ;;  %v171_v27 = vld [vmem:[%s1042_s2 + $0x3e0] sm:$0xff]  ;;  %v50_v30 = vld [vmem:[%s1042_s2 + $0x18] sm:$0xff]  ;;  %v81_v32 = vld [vmem:[%s1042_s2 + $0x110] sm:$0xff] }
  0x47   :  { %369 = vmatpush.msra.mxu0 %v116_v6  ;;  %389 = vmatpush.msra.mxu1 %v196_v7  ;;  %v130_v31 = vld [vmem:[%s1042_s2 + $0x298] sm:$0xff]  ;;  %v161_v33 = vld [vmem:[%s1042_s2 + $0x390] sm:$0xff]  ;;  %v76_v34 = vld [vmem:[%s1042_s2 + $0xe8] sm:$0xff] }
  0x48   :  { %263 = vmatmul.f32.vlgmr.msra.gmra.mxu2 %v766_v22  ;;  %283 = vmatmul.f32.vlgmr.msra.gmra.mxu3 %v774_v25  ;;  %v156_v35 = vld [vmem:[%s1042_s2 + $0x368] sm:$0xff]  ;;  %v71_v36 = vld [vmem:[%s1042_s2 + $0xc0] sm:$0xff]  ;;  %v66_v38 = vld [vmem:[%s1042_s2 + $0x98] sm:$0xff] }
  0x49   :  { %370 = vmatpush.msra.mxu0 %v111_v10  ;;  %390 = vmatpush.msra.mxu1 %v191_v11  ;;  %v151_v37 = vld [vmem:[%s1042_s2 + $0x340] sm:$0xff]  ;;  %v146_v39 = vld [vmem:[%s1042_s2 + $0x318] sm:$0xff]  ;;  %v61_v40 = vld [vmem:[%s1042_s2 + $0x70] sm:$0xff] }
  0x4a   :  { %339 = vmatpush.msrb.mxu2 %v65_v14  ;;  %359 = vmatpush.msrb.mxu3 %v145_v15  ;;  %v141_v41 = vld [vmem:[%s1042_s2 + $0x2f0] sm:$0xff]  ;;  %v56_v42 = vld [vmem:[%s1042_s2 + $0x48] sm:$0xff]  ;;  %v51_v44 = vld [vmem:[%s1042_s2 + $0x20] sm:$0xff] }
  0x4b   :  { %371 = vmatpush.msra.mxu0 %v106_v12  ;;  %391 = vmatpush.msra.mxu1 %v186_v13  ;;  %v136_v43 = vld [vmem:[%s1042_s2 + $0x2c8] sm:$0xff]  ;;  %v131_v45 = vld [vmem:[%s1042_s2 + $0x2a0] sm:$0xff]  ;;  %s500_s2 = smov [#allocation5]  }
  0x4c   :  { %340 = vmatpush.msrb.mxu2 %v60_v18  ;;  %360 = vmatpush.msrb.mxu3 %v140_v19  ;;  %s428_s3 = sshll.u32 %s500_s2, 4  ;;  %s429_s3 = int_to_ptr.vmem [resolvable:$true] %s428_s3 }
  0x4d   :  { %372 = vmatpush.msra.mxu0 %v101_v16  ;;  %392 = vmatpush.msra.mxu1 %v181_v17 }
  0x4e   :  { %341 = vmatpush.msrb.mxu2 %v55_v23  ;;  %361 = vmatpush.msrb.mxu3 %v135_v24 }
  0x4f   :  { %373 = vmatpush.msra.mxu0 %v96_v20  ;;  %393 = vmatpush.msra.mxu1 %v176_v21 }
  0x50   :  { %303 = vmatmul.f32.vlgmr.msrb.gmra.mxu0 %v766_v22  ;;  %323 = vmatmul.f32.vlgmr.msrb.gmra.mxu1 %v774_v25 }
  0x51   :  { %374 = vmatpush.msra.mxu0 %v91_v26  ;;  %394 = vmatpush.msra.mxu1 %v171_v27 }
  0x52   :  { %342 = vmatpush.msrb.mxu2 %v50_v30  ;;  %362 = vmatpush.msrb.mxu3 %v130_v31 }
  0x53   :  { %375 = vmatpush.msra.mxu0 %v86_v28  ;;  %395 = vmatpush.msra.mxu1 %v166_v29 }
  0x54   :  { %343 = vmatmul.f32.vlgmr.msrb.gmra.mxu2 %v766_v22  ;;  %363 = vmatmul.f32.vlgmr.msrb.gmra.mxu3 %v774_v25 }
  0x55   :  { %376 = vmatpush.msra.mxu0 %v81_v32  ;;  %396 = vmatpush.msra.mxu1 %v161_v33 }
  0x57   :  { %377 = vmatpush.msra.mxu0 %v76_v34  ;;  %397 = vmatpush.msra.mxu1 %v156_v35 }
  0x59   :  { %378 = vmatpush.msra.mxu0 %v71_v36  ;;  %398 = vmatpush.msra.mxu1 %v151_v37 }
  0x5b   :  { %379 = vmatpush.msra.mxu0 %v66_v38  ;;  %399 = vmatpush.msra.mxu1 %v146_v39 }
  0x5d   :  { %380 = vmatpush.msra.mxu0 %v61_v40  ;;  %400 = vmatpush.msra.mxu1 %v141_v41 }
  0x5f   :  { %381 = vmatpush.msra.mxu0 %v56_v42  ;;  %401 = vmatpush.msra.mxu1 %v136_v43 }
  0x61   :  { %382 = vmatpush.msra.mxu0 %v51_v44  ;;  %402 = vmatpush.msra.mxu1 %v131_v45 }
  0x62   :  { %383 = vmatmul.f32.vlgmr.msra.gmra.mxu0 %v766_v22  ;;  %403 = vmatmul.f32.vlgmr.msra.gmra.mxu1 %v774_v25 }
  0xa9   :  { %v244_v47 = vpop.f32.mrf.mxu1 }
  0xaa   :  { %v224_v46 = vpop.f32.mrf.mxu0 }
  0xab   :  { %v245_v48 = vadd.f32 %v244_v47, %v224_v46 }
  0xad   :  { %407 = vst [vmem:[#allocation5] sm:$0xff] %v245_v48 }
  0xcb   :  { %v264_v49 = vpop.f32.mrf.mxu2  ;;  %v284_v50 = vpop.f32.mrf.mxu3 }
  0xcc   :  { %v285_v51 = vadd.f32 %v284_v50, %v264_v49 }
  0xcd   :  { %v304_v52 = vpop.f32.mrf.mxu0  ;;  %v324_v53 = vpop.f32.mrf.mxu1 }
  0xce   :  { %408 = vst [vmem:[#allocation5 + $0x8] sm:$0xff] %v285_v51  ;;  %v325_v54 = vadd.f32 %v324_v53, %v304_v52 }
  0xd0   :  { %409 = vst [vmem:[#allocation5 + $0x10] sm:$0xff] %v325_v54 }
  0xd7   :  { %v344_v55 = vpop.f32.mrf.mxu2  ;;  %v364_v56 = vpop.f32.mrf.mxu3 }
  0xd8   :  { %v365_v22 = vadd.f32 %v364_v56, %v344_v55 }
  0xda   :  { %410 = vst [vmem:[#allocation5 + $0x18] sm:$0xff] %v365_v22 }
  0xdf   :  { %v384_v25 = vpop.f32.mrf.mxu0  ;;  %v404_v57 = vpop.f32.mrf.mxu1 }
  0xe0   :  { %v405_v58 = vadd.f32 %v404_v57, %v384_v25 }
  0xe2   :  { %411 = vst [vmem:[#allocation5 + $0x20] sm:$0xff] %v405_v58 }
  0xe3   :  { %433 = dma.vmem_to_hbm [thread:$0]  %s429_s3, 640, %s431_s24, [#allocation6]  }
  0xe4   :  { %495 = dma.done.wait [#allocation4], 256  }
  0xe5   :  { %496 = vsyncadd [#allocation4], 4294967040 }
  0xe6   :  { %497 = dma.done.wait [#allocation6], 640  }
  0xe7   :  { %498 = vsyncadd [#allocation6], 4294966656 }
  0xe8   :  { %442 = vsyncpa [#allocation4], 1 }
  0xe9   :  { %443 = vsyncpa [#allocation6], 1 }

</bundles_post_ra>
